<compile_context>
chip_gen: v7x
topology: tpu7x:2x2x1
jax: 0.10.0
libtpu: 0.0.40
codegen_flags: <defaults>
</compile_context>

<pallas_src>
import jax
import jax.numpy as jnp
from jax.experimental import pallas as pl
from jax.experimental.pallas import tpu as pltpu

LANE = 128
MIB = 1024 * 1024


def _round_up(x, m):
    return (x + m - 1) // m * m


# ---------------------------------------------------------------------------
# Path A: one grid=() call over a block-diagonal adjacency (tiny B*N).
# ---------------------------------------------------------------------------
def _gcn_blockdiag_kernel(x_ref, adj_ref, w1_ref, b1_ref, w2_ref, b2_ref, out_ref):
    x = x_ref[...]        # (M, F_in)  bf16, M = B*N
    adj = adj_ref[...]    # (M, M)     bf16, block-diagonal over graphs

    # Layer 1: Linear -> adj aggregation -> ReLU (f32 accumulation on MXU)
    h1 = jnp.dot(x, w1_ref[...], preferred_element_type=jnp.float32) + b1_ref[...]
    h1 = jnp.dot(adj, h1.astype(jnp.bfloat16), preferred_element_type=jnp.float32)
    h1 = jnp.maximum(h1, 0.0)

    # Layer 2
    h2 = jnp.dot(h1.astype(jnp.bfloat16), w2_ref[...],
                 preferred_element_type=jnp.float32) + b2_ref[...]
    h2 = jnp.dot(adj, h2.astype(jnp.bfloat16), preferred_element_type=jnp.float32)
    out_ref[...] = jnp.maximum(h2, 0.0).astype(out_ref.dtype)


# ---------------------------------------------------------------------------
# Path B: grid over the graph batch, Gb graphs per step.
# ---------------------------------------------------------------------------
def _gcn_batched_kernel(x_ref, adj_ref, w1_ref, b1_ref, w2_ref, b2_ref, out_ref):
    Gb, N, F_in = x_ref.shape
    adj = adj_ref[...]                                       # (Gb, N, N) bf16

    # Linear 1 over all Gb*N rows at once (fills the MXU M dimension).
    x2d = x_ref[...].reshape(Gb * N, F_in)
    h1 = jnp.dot(x2d, w1_ref[...], preferred_element_type=jnp.float32) + b1_ref[...]
    h1 = h1.astype(jnp.bfloat16).reshape(Gb, N, -1)
    # Per-graph aggregation (batched MXU dot), then ReLU in f32.
    h1 = jnp.einsum('gnm,gmh->gnh', adj, h1, preferred_element_type=jnp.float32)
    h1 = jnp.maximum(h1, 0.0)

    # Linear 2 over all rows.
    h1_2d = h1.astype(jnp.bfloat16).reshape(Gb * N, -1)
    h2 = jnp.dot(h1_2d, w2_ref[...], preferred_element_type=jnp.float32) + b2_ref[...]
    h2 = h2.astype(jnp.bfloat16).reshape(Gb, N, -1)
    h2 = jnp.einsum('gnm,gmh->gnh', adj, h2, preferred_element_type=jnp.float32)
    out_ref[...] = jnp.maximum(h2, 0.0).astype(out_ref.dtype)


def _pick_graphs_per_step(B, N, target_rows=256):
    """Largest divisor of B so that Gb*N roughly fills the MXU row dimension."""
    gb = max(1, min(B, max(1, target_rows // max(N, 1))))
    while B % gb:
        gb -= 1
    return gb


def _pad_params(w1, b1, w2, b2, H_pad, F_pad):
    """Zero-pad hidden/output feature dims to 128 lanes (padding is inert)."""
    F_in, H = w1.shape
    F_out = w2.shape[1]
    w1_p = jnp.zeros((F_in, H_pad), jnp.bfloat16).at[:, :H].set(w1.astype(jnp.bfloat16))
    b1_p = jnp.zeros((1, H_pad), jnp.float32).at[:, :H].set(
        b1.reshape(1, H).astype(jnp.float32))
    w2_p = jnp.zeros((H_pad, F_pad), jnp.bfloat16).at[:H, :F_out].set(
        w2.astype(jnp.bfloat16))
    b2_p = jnp.zeros((1, F_pad), jnp.float32).at[:, :F_out].set(
        b2.reshape(1, F_out).astype(jnp.float32))
    return w1_p, b1_p, w2_p, b2_p


def gcn_layer(x, adj, w1, b1, w2, b2, *, force_path=None):
    """Batched GCN_Layer forward.

    x:   (B, N, F_in)   node features per graph
    adj: (B, N, N)      adjacency per graph
    w1:  (F_in, 48)  (= W.weight.T)     b1: (1, 48)
    w2:  (48, F_out) (= W2.weight.T)    b2: (1, F_out)
    force_path: None (auto) | "blockdiag" | "grid"
    returns (B, N, F_out) float32
    """
    B, N, F_in = x.shape
    H = w1.shape[1]
    F_out = w2.shape[1]
    H_pad = _round_up(H, LANE)
    F_pad = _round_up(F_out, LANE)

    w1_p, b1_p, w2_p, b2_p = _pad_params(w1, b1, w2, b2, H_pad, F_pad)
    x_b = x.astype(jnp.bfloat16)
    adj_b = adj.astype(jnp.bfloat16)

    M = B * N
    param_bytes = w1_p.size * 2 + b1_p.size * 4 + w2_p.size * 2 + b2_p.size * 4

    # VMEM footprint of the fully fused (block-diagonal) variant.
    fused_bytes = (M * F_in * 2          # x
                   + M * M * 2           # block-diag adj (bf16)
                   + M * F_pad * 4       # f32 output slab
                   + 3 * M * H_pad * 4   # f32 intermediates (rough)
                   + param_bytes)

    use_blockdiag = fused_bytes <= 16 * MIB
    if force_path == "blockdiag":
        use_blockdiag = True
    elif force_path == "grid":
        use_blockdiag = False

    if use_blockdiag:
        # Tiny B*N: zero-FLOP padding is free, the kernel is launch/latency
        # bound, so one dense single-call matmul chain wins.
        eye = jnp.eye(B, dtype=adj_b.dtype)
        adj_bd = (eye[:, None, :, None] * adj_b[:, :, None, :]).reshape(M, M)
        x2d = x_b.reshape(M, F_in)

        vmem_limit = int(min(64 * MIB, max(32 * MIB, 4 * fused_bytes)))
        out2d = pl.pallas_call(
            _gcn_blockdiag_kernel,
            out_shape=jax.ShapeDtypeStruct((M, F_pad), jnp.float32),
            compiler_params=pltpu.CompilerParams(vmem_limit_bytes=vmem_limit),
        )(x2d, adj_bd, w1_p, b1_p, w2_p, b2_p)
        out_padded = out2d.reshape(B, N, F_pad)
    else:
        Gb = _pick_graphs_per_step(B, N)
        step_bytes = Gb * (N * F_in * 2 + N * N * 2 + N * F_pad * 4
                           + 3 * N * H_pad * 4) + param_bytes
        # Explicit headroom for double-buffered streamed blocks instead of the
        # default scoped-VMEM limit; clamped to v7x's 64 MiB physical VMEM.
        vmem_limit = int(min(64 * MIB, max(32 * MIB, 4 * step_bytes)))

        out_padded = pl.pallas_call(
            _gcn_batched_kernel,
            out_shape=jax.ShapeDtypeStruct((B, N, F_pad), jnp.float32),
            grid=(B // Gb,),
            in_specs=[
                pl.BlockSpec((Gb, N, F_in), lambda b: (b, 0, 0)),    # x
                pl.BlockSpec((Gb, N, N), lambda b: (b, 0, 0)),       # adj
                pl.BlockSpec((F_in, H_pad), lambda b: (0, 0)),       # w1 (shared)
                pl.BlockSpec((1, H_pad), lambda b: (0, 0)),          # b1 (shared)
                pl.BlockSpec((H_pad, F_pad), lambda b: (0, 0)),      # w2 (shared)
                pl.BlockSpec((1, F_pad), lambda b: (0, 0)),          # b2 (shared)
            ],
            out_specs=pl.BlockSpec((Gb, N, F_pad), lambda b: (b, 0, 0)),
            compiler_params=pltpu.CompilerParams(
                dimension_semantics=("parallel",),
                vmem_limit_bytes=vmem_limit,
            ),
        )(x_b, adj_b, w1_p, b1_p, w2_p, b2_p)

    # Slice the lane-padded slab back to the true feature width.  (If the
    # downstream consumer is memory-bound at large N, keep the padded slab
    # and/or emit bf16 from the kernel instead to cut the HBM writeback.)
    return out_padded[:, :, :F_out]


def gcn_layer_ref(x, adj, w1, b1, w2, b2):
    h1 = jnp.maximum(adj @ (x @ w1 + b1), 0.0)
    return jnp.maximum(adj @ (h1 @ w2 + b2), 0.0)


if __name__ == "__main__":
    hidden = 48   # fixed inner width of the module

    def make_inputs(key, B, N, in_features, out_features):
        kx, kadj, kw1, kb1, kw2, kb2 = jax.random.split(key, 6)
        x = jax.random.normal(kx, (B, N, in_features), dtype=jnp.float32)
        # row-normalized adjacency with self-loops (typical GCN input)
        a = (jax.random.uniform(kadj, (B, N, N)) > 0.5).astype(jnp.float32)
        a = a + jnp.eye(N, dtype=jnp.float32)[None]
        adj = a / jnp.sum(a, axis=-1, keepdims=True)
        # Deterministic init matching the module: U(-stdv, stdv), stdv = 1/sqrt(fan_in)
        stdv1 = 1.0 / (in_features ** 0.5)
        stdv2 = 1.0 / (hidden ** 0.5)
        w1 = jax.random.uniform(kw1, (in_features, hidden), minval=-stdv1, maxval=stdv1)
        b1 = jax.random.uniform(kb1, (1, hidden), minval=-stdv1, maxval=stdv1)
        w2 = jax.random.uniform(kw2, (hidden, out_features), minval=-stdv2, maxval=stdv2)
        b2 = jax.random.uniform(kb2, (1, out_features), minval=-stdv2, maxval=stdv2)
        return x, adj, w1, b1, w2, b2

    key = jax.random.PRNGKey(0)
    k1, k2 = jax.random.split(key)

    # Case 1: module-default tiny shapes -> auto-selects the fused
    # block-diagonal single-call path (no per-step launch overhead).
    B, N, Fi, Fo = 4, 8, 32, 16
    x, adj, w1, b1, w2, b2 = make_inputs(k1, B, N, Fi, Fo)
    out = gcn_layer(x, adj, w1, b1, w2, b2)
    jax.block_until_ready(out)
    ref = gcn_layer_ref(x, adj, w1, b1, w2, b2)
    assert out.shape == (B, N, Fo)
    assert jnp.allclose(out, ref, atol=5e-2, rtol=5e-2), "blockdiag path mismatch"

    # Case 2: larger graphs/batch -> batched-grid path (Gb graphs per step).
    B, N, Fi, Fo = 8, 128, 64, 16
    x, adj, w1, b1, w2, b2 = make_inputs(k2, B, N, Fi, Fo)
    out = gcn_layer(x, adj, w1, b1, w2, b2, force_path="grid")
    jax.block_until_ready(out)
    ref = gcn_layer_ref(x, adj, w1, b1, w2, b2)
    assert out.shape == (B, N, Fo)
    assert jnp.allclose(out, ref, atol=5e-2, rtol=5e-2), "grid path mismatch"

    print("KERNEL_OK")
</pallas_src>

<mosaic_0001>
module attributes {stable_mosaic.version = 11 : i64} {
  func.func @_gcn_blockdiag_kernel(%arg0: memref<32x32xbf16, #tpu.memory_space<vmem>>, %arg1: memref<32x32xbf16, #tpu.memory_space<vmem>>, %arg2: memref<32x128xbf16, #tpu.memory_space<vmem>>, %arg3: memref<1x128xf32, #tpu.memory_space<vmem>>, %arg4: memref<128x128xbf16, #tpu.memory_space<vmem>>, %arg5: memref<1x128xf32, #tpu.memory_space<vmem>>, %arg6: memref<32x128xf32, #tpu.memory_space<vmem>>) attributes {dimension_semantics = [], scalar_prefetch = 0 : i64, scratch_operands = 0 : i64, tpu.core_type = #tpu.core_type<tc>} {
    %c0 = arith.constant 0 : index
    %c0_0 = arith.constant 0 : index
    %0 = vector.load %arg0[%c0, %c0_0] : memref<32x32xbf16, #tpu.memory_space<vmem>>, vector<32x32xbf16>
    %c0_1 = arith.constant 0 : index
    %c0_2 = arith.constant 0 : index
    %1 = vector.load %arg1[%c0_1, %c0_2] : memref<32x32xbf16, #tpu.memory_space<vmem>>, vector<32x32xbf16>
    %c0_3 = arith.constant 0 : index
    %c0_4 = arith.constant 0 : index
    %2 = vector.load %arg2[%c0_3, %c0_4] : memref<32x128xbf16, #tpu.memory_space<vmem>>, vector<32x128xbf16>
    %cst = arith.constant dense<0.000000e+00> : vector<32x128xf32>
    %3 = tpu.matmul %0, %2, %cst {dimension_numbers = #tpu.dot_dimension_numbers<[1], [0], [0], [1], [0, 0, 1, 1], [], []>} : vector<32x32xbf16>, vector<32x128xbf16>, vector<32x128xf32> -> vector<32x128xf32>
    %c0_5 = arith.constant 0 : index
    %c0_6 = arith.constant 0 : index
    %4 = vector.load %arg3[%c0_5, %c0_6] : memref<1x128xf32, #tpu.memory_space<vmem>>, vector<1x128xf32>
    %5 = vector.broadcast %4 : vector<1x128xf32> to vector<32x128xf32>
    %6 = arith.addf %3, %5 : vector<32x128xf32>
    %7 = arith.truncf %6 : vector<32x128xf32> to vector<32x128xbf16>
    %cst_7 = arith.constant dense<0.000000e+00> : vector<32x128xf32>
    %8 = tpu.matmul %1, %7, %cst_7 {dimension_numbers = #tpu.dot_dimension_numbers<[1], [0], [0], [1], [0, 0, 1, 1], [], []>} : vector<32x32xbf16>, vector<32x128xbf16>, vector<32x128xf32> -> vector<32x128xf32>
    %cst_8 = arith.constant 0.000000e+00 : f32
    %9 = vector.broadcast %cst_8 : f32 to vector<32x128xf32>
    %10 = arith.maximumf %8, %9 : vector<32x128xf32>
    %11 = arith.truncf %10 : vector<32x128xf32> to vector<32x128xbf16>
    %c0_9 = arith.constant 0 : index
    %c0_10 = arith.constant 0 : index
    %12 = vector.load %arg4[%c0_9, %c0_10] : memref<128x128xbf16, #tpu.memory_space<vmem>>, vector<128x128xbf16>
    %cst_11 = arith.constant dense<0.000000e+00> : vector<32x128xf32>
    %13 = tpu.matmul %11, %12, %cst_11 {dimension_numbers = #tpu.dot_dimension_numbers<[1], [0], [0], [1], [0, 0, 1, 1], [], []>} : vector<32x128xbf16>, vector<128x128xbf16>, vector<32x128xf32> -> vector<32x128xf32>
    %c0_12 = arith.constant 0 : index
    %c0_13 = arith.constant 0 : index
    %14 = vector.load %arg5[%c0_12, %c0_13] : memref<1x128xf32, #tpu.memory_space<vmem>>, vector<1x128xf32>
    %15 = vector.broadcast %14 : vector<1x128xf32> to vector<32x128xf32>
    %16 = arith.addf %13, %15 : vector<32x128xf32>
    %17 = arith.truncf %16 : vector<32x128xf32> to vector<32x128xbf16>
    %cst_14 = arith.constant dense<0.000000e+00> : vector<32x128xf32>
    %18 = tpu.matmul %1, %17, %cst_14 {dimension_numbers = #tpu.dot_dimension_numbers<[1], [0], [0], [1], [0, 0, 1, 1], [], []>} : vector<32x32xbf16>, vector<32x128xbf16>, vector<32x128xf32> -> vector<32x128xf32>
    %cst_15 = arith.constant 0.000000e+00 : f32
    %19 = vector.broadcast %cst_15 : f32 to vector<32x128xf32>
    %20 = arith.maximumf %18, %19 : vector<32x128xf32>
    %c0_16 = arith.constant 0 : index
    %c0_17 = arith.constant 0 : index
    %21 = vector.load %arg6[%c0_16, %c0_17] : memref<32x128xf32, #tpu.memory_space<vmem>>, vector<32x128xf32>
    tpu.vector_store %arg6[%c0_16, %c0_17], %20 {strides = array<i32>} : memref<32x128xf32, #tpu.memory_space<vmem>>, vector<32x128xf32>,
    return
  }
}

</mosaic_0001>

<bundles_post_ra>
// kernel: tpu_custom_call.1
= control target key start
LH: loop header
LB: loop body
LE: loop exit
PB: predicated region body
PF: predicated region fallthrough
CT: control target
= control target key end

     0   :  { %11 = vsyncpa [#allocation3], 0  ;;  %s819_s0 = inlined_call_operand.hbm [shape: bf16[32,32], index: 0, kind: input, shape index: {}]   ;;  %s820_s1 = inlined_call_operand.hbm [shape: bf16[32,32], index: 1, kind: input, shape index: {}]   ;;  %s821_s2 = inlined_call_operand.hbm [shape: bf16[32,128], index: 2, kind: input, shape index: {}]   ;;  %s822_s3 = inlined_call_operand.vmem [shape: f32[1,128], index: 3, kind: input, shape index: {}]   ;;  %s823_s4 = inlined_call_operand.hbm [shape: bf16[128,128], index: 4, kind: input, shape index: {}]   ;;  %s824_s5 = inlined_call_operand.vmem [shape: f32[1,128], index: 5, kind: input, shape index: {}]   ;;  %s825_s6 = inlined_call_operand.hbm [shape: f32[32,128], index: 6, kind: output, shape index: {}]  }
   0x1   :  { %12 = vsyncpa [#allocation6], 0 }
   0x2   :  { %13 = vsyncpa [#allocation9], 0 }
   0x3   :  { %14 = vsyncpa [#allocation4], 0  ;;  %s677_s21 = smov [#allocation5]   ;;  %s678_s23 = smov [#allocation2]  }
   0x4   :  { %s32_s22 = sshll.u32 %s677_s21, 4  ;;  %s20_s24 = sshll.u32 %s678_s23, 4  ;;  %s33_s22 = int_to_ptr.vmem [resolvable:$true] %s32_s22  ;;  %s721_s24 = int_to_ptr.vmem [resolvable:$true] %s20_s24 }
   0x5   :  { %s559_s27 = scalar_lea.hbm %s820_s1, 256 }
   0x6   :  { %p560_p0 = scmp.ne.s32.totalorder %s820_s1, %s559_s27  ;;  %p563_p1 = scmp.lt.u32.totalorder %s559_s27, %s820_s1 }
   0x8   :  { %p565_p2 = pnand %p563_p1, %p560_p0 }
   0xa   :  { %568 = shalt.err (!%p565_p2)
}
   0xb   :  { %s569_s8 = scalar_lea.vmem %s33_s22, 256  ;;  %p574_p4 = scmp.lt.s32.totalorder %s33_s22, %s33_s22 }
   0xc   :  { %p570_p3 = scmp.ne.s32.totalorder %s33_s22, %s569_s8  ;;  %p575_p5 = scmp.lt.s32.totalorder %s569_s8, %s569_s8 }
   0xe   :  { %p576_p6 = por %p575_p5, %p574_p4 }
  0x10   :  { %p577_p7 = pnand %p576_p6, %p570_p3 }
  0x12   :  { %580 = shalt.err (!%p577_p7)
}
  0x13   :  { %s679_s9 = smov 64   ;;  %s680_s10 = smov 4  }
  0x14   :  { %38 = dma.hbm_to_vmem [thread:$0]  %s820_s1, 256, %s33_s22, [#allocation6], %s679_s9, %s679_s9, %s680_s10  }
  0x15   :  { %s581_s15 = scalar_lea.hbm %s819_s0, 256 }
  0x16   :  { %p582_p8 = scmp.ne.s32.totalorder %s819_s0, %s581_s15  ;;  %p585_p9 = scmp.lt.u32.totalorder %s581_s15, %s819_s0 }
  0x18   :  { %p587_p10 = pnand %p585_p9, %p582_p8 }
  0x1a   :  { %590 = shalt.err (!%p587_p10)
}
  0x1b   :  { %s591_s20 = scalar_lea.vmem %s721_s24, 256  ;;  %p596_p12 = scmp.lt.s32.totalorder %s721_s24, %s721_s24 }
  0x1c   :  { %p592_p11 = scmp.ne.s32.totalorder %s721_s24, %s591_s20  ;;  %p597_p13 = scmp.lt.s32.totalorder %s591_s20, %s591_s20 }
  0x1e   :  { %p598_p0 = por %p597_p13, %p596_p12 }
  0x20   :  { %p599_p1 = pnand %p598_p0, %p592_p11 }
  0x22   :  { %602 = shalt.err (!%p599_p1)
}
  0x23   :  { %26 = dma.hbm_to_vmem [thread:$0]  %s819_s0, 256, %s721_s24, [#allocation3], %s679_s9, %s679_s9, %s680_s10  }
  0x24   :  { %s681_s22 = smov [#allocation7]   ;;  %s682_s25 = smov [#allocation8]  }
  0x25   :  { %s44_s23 = sshll.u32 %s681_s22, 4  ;;  %s58_s26 = sshll.u32 %s682_s25, 4  ;;  %s45_s23 = int_to_ptr.vmem [resolvable:$true] %s44_s23  ;;  %s758_s26 = int_to_ptr.vmem [resolvable:$true] %s58_s26 }
  0x26   :  { %s603_s29 = scalar_lea.hbm %s821_s2, 256 }
  0x27   :  { %p604_p2 = scmp.ne.s32.totalorder %s821_s2, %s603_s29  ;;  %p607_p3 = scmp.lt.u32.totalorder %s603_s29, %s821_s2 }
  0x29   :  { %p609_p4 = pnand %p607_p3, %p604_p2 }
  0x2b   :  { %612 = shalt.err (!%p609_p4)
}
  0x2c   :  { %s613_s0 = scalar_lea.vmem %s45_s23, 256  ;;  %p618_p6 = scmp.lt.s32.totalorder %s45_s23, %s45_s23 }
  0x2d   :  { %p614_p5 = scmp.ne.s32.totalorder %s45_s23, %s613_s0  ;;  %p619_p7 = scmp.lt.s32.totalorder %s613_s0, %s613_s0 }
  0x2f   :  { %p620_p8 = por %p619_p7, %p618_p6 }
  0x31   :  { %p621_p9 = pnand %p620_p8, %p614_p5 }
  0x33   :  { %624 = shalt.err (!%p621_p9)
}
  0x34   :  { %50 = dma.hbm_to_vmem [thread:$0]  %s821_s2, 256, %s45_s23, [#allocation6], %s679_s9, %s679_s9, %s680_s10  }
  0x35   :  { %s625_s15 = scalar_lea.hbm %s823_s4, 1024 }
  0x36   :  { %p626_p10 = scmp.ne.s32.totalorder %s823_s4, %s625_s15  ;;  %p629_p11 = scmp.lt.u32.totalorder %s625_s15, %s823_s4 }
  0x38   :  { %p631_p12 = pnand %p629_p11, %p626_p10 }
  0x3a   :  { %634 = shalt.err (!%p631_p12)
}
  0x3b   :  { %s635_s20 = scalar_lea.vmem %s758_s26, 1024  ;;  %p640_p0 = scmp.lt.s32.totalorder %s758_s26, %s758_s26 }
  0x3c   :  { %p636_p13 = scmp.ne.s32.totalorder %s758_s26, %s635_s20  ;;  %p641_p1 = scmp.lt.s32.totalorder %s635_s20, %s635_s20 }
  0x3e   :  { %p642_p2 = por %p641_p1, %p640_p0 }
  0x40   :  { %p643_p3 = pnand %p642_p2, %p636_p13 }
  0x42   :  { %646 = shalt.err (!%p643_p3)
}
  0x43   :  { %64 = dma.hbm_to_vmem [thread:$0]  %s823_s4, 1024, %s758_s26, [#allocation9], %s679_s9, %s679_s9, %s680_s10  }
  0x44   :  { %669 = dma.done.wait [#allocation3], 256  }
  0x45   :  { %670 = vsyncadd [#allocation3], 4294967040 }
  0x46   :  { %671 = dma.done.wait [#allocation6], 512  }
  0x47   :  { %672 = vsyncadd [#allocation6], 4294966784 }
  0x48   :  { %673 = dma.done.wait [#allocation9], 1024  }
  0x49   :  { %674 = vsyncadd [#allocation9], 4294966272  ;;  %v545_v0 = vld [vmem:[#allocation7] sm:$0xff]   ;;  %v546_v1 = vld [vmem:[#allocation7 + $0x8] sm:$0xff]   ;;  %vm121_vm0 = vcmask 261120   ;;  %s683_s21 = smov [#allocation10]  }
  0x4a   :  { %492 = vmatprep.subr.bf16.mxu1 %v545_v0  ;;  %v547_v2 = vld [vmem:[#allocation2] sm:$0xff]   ;;  %v548_v3 = vld [vmem:[#allocation2 + $0x8] sm:$0xff]   ;;  %v549_v4 = vld [vmem:[#allocation5] sm:$0xff]   ;;  %s434_s22 = sshll.u32 %s683_s21, 4  ;;  %s435_s22 = int_to_ptr.vmem [resolvable:$true] %s434_s22 }
  0x4b   :  { %493 = vmatpush3.bf16.msra.mxu1 %v545_v0  ;;  %496 = vmatprep.mubr.msk.bf16.mxu1 %vm121_vm0, %v547_v2  ;;  %v551_v5 = vld [vmem:[#allocation8] sm:$0xff]   ;;  %v552_v6 = vld [vmem:[#allocation8 + $0x8] sm:$0xff]   ;;  %v553_v7 = vld [vmem:[#allocation8 + $0x10] sm:$0xff]   ;;  %p652_p5 = scmp.lt.s32.totalorder %s435_s22, %s435_s22 }
  0x4c   :  { %494 = vmatprep.subr.bf16.mxu1 %v546_v1  ;;  %508 = vmatprep.subr.bf16.mxu0 %v551_v5  ;;  %v554_v8 = vld [vmem:[#allocation8 + $0x18] sm:$0xff]   ;;  %v555_v9 = vld [vmem:[#allocation8 + $0x20] sm:$0xff]   ;;  %v556_v10 = vld [vmem:[#allocation8 + $0x28] sm:$0xff]  }
  0x4d   :  { %509 = vmatpush3.bf16.msra.mxu0 %v551_v5  ;;  %v448_v12 = vld [vmem:[%s822_s3] ss:$0 sm:$0xff]  ;;  %v550_v22 = vld [vmem:[#allocation5 + $0x8] sm:$0xff]   ;;  %v558_v24 = vld [vmem:[#allocation8 + $0x38] sm:$0xff]  }
  0x4e   :  { %510 = vmatprep.subr.bf16.mxu0 %v552_v6  ;;  %v557_v23 = vld [vmem:[#allocation8 + $0x30] sm:$0xff]  }
  0x4f   :  { %495 = vmatpush3.bf16.msra.mxu1 %v546_v1  ;;  %v459_v36 = vld [vmem:[%s824_s5] ss:$0 sm:$0xff]  ;;  %s647_s5 = scalar_lea.vmem %s435_s22, 512 }
  0x50   :  { %p648_p4 = scmp.ne.s32.totalorder %s435_s22, %s647_s5  ;;  %p653_p6 = scmp.lt.s32.totalorder %s647_s5, %s647_s5 }
  0x51   :  { %511 = vmatpush3.bf16.msra.mxu0 %v552_v6 }
  0x52   :  { %497 = vmatmul.mubr.msk.bf16.vlgmr.msra.gmra.mrb[0].mxu1 %vm121_vm0, %v548_v3  ;;  %512 = vmatprep.subr.bf16.mxu0 %v553_v7  ;;  %p654_p7 = por %p653_p6, %p652_p5 }
  0x53   :  { %504 = vmatprep.mubr.msk.bf16.mxu1 %vm121_vm0, %v549_v4 }
  0x54   :  { %p655_p8 = pnand %p654_p7, %p648_p4 }
  0x55   :  { %513 = vmatpush3.bf16.msra.mxu0 %v553_v7 }
  0x56   :  { %514 = vmatprep.subr.bf16.mxu0 %v554_v8 }
  0x59   :  { %515 = vmatpush3.bf16.msra.mxu0 %v554_v8 }
  0x5a   :  { %516 = vmatprep.subr.bf16.mxu0 %v555_v9 }
  0x5d   :  { %517 = vmatpush3.bf16.msra.mxu0 %v555_v9 }
  0x5e   :  { %518 = vmatprep.subr.bf16.mxu0 %v556_v10 }
  0x61   :  { %519 = vmatpush3.bf16.msra.mxu0 %v556_v10 }
  0x62   :  { %520 = vmatprep.subr.bf16.mxu0 %v557_v23 }
  0x65   :  { %521 = vmatpush3.bf16.msra.mxu0 %v557_v23 }
  0x66   :  { %522 = vmatprep.subr.bf16.mxu0 %v558_v24 }
  0x69   :  { %523 = vmatpush3.bf16.msra.mxu0 %v558_v24 }
 0x125   :  { %v498_v11 = vpop.f32.mrb[0].mxu1 }
 0x126   :  { %v162_v13 = vpop.f32.mrb[1].mxu1  ;;  %v171_v15 = vadd.f32 %v498_v11, %v448_v12 }
 0x127   :  { %v499_v14 = vpop.f32.mrb[2].mxu1  ;;  %v163_v18 = vadd.f32 %v448_v12, %v162_v13 }
 0x128   :  { %v174_v16 = vadd.f32 %v499_v14, %v448_v12  ;;  %v165_v17 = vpop.f32.mrb[3].mxu1 }
 0x129   :  { %v166_v19 = vadd.f32 %v448_v12, %v165_v17 }
 0x12a   :  { %v178_v20 = vpack.c.bf16 %v174_v16, %v171_v15 }
 0x12b   :  { %v177_v21 = vpack.c.bf16 %v166_v19, %v163_v18 }
 0x12d   :  { %500 = vmatprep.subr.bf16.mxu1 %v177_v21 }
 0x12e   :  { %501 = vmatpush3.bf16.msra.mxu1 %v177_v21 }
 0x12f   :  { %502 = vmatprep.subr.bf16.mxu1 %v178_v20 }
 0x132   :  { %503 = vmatpush3.bf16.msra.mxu1 %v178_v20 }
 0x135   :  { %505 = vmatmul.mubr.msk.bf16.vlgmr.msra.gmra.mrb[4].mxu1 %vm121_vm0, %v550_v22 }
 0x136   :  { %532 = vmatprep.mubr.msk.bf16.mxu1 %vm121_vm0, %v549_v4 }
 0x208   :  { %v506_v25 = vpop.f32.mrb[4].mxu1 }
 0x209   :  { %v229_v26 = vpop.f32.mrb[5].mxu1  ;;  %v246_v28 = vmax.f32 %v506_v25, 0.0 }
 0x20a   :  { %v507_v27 = vpop.f32.mrb[6].mxu1  ;;  %v244_v31 = vmax.f32 %v229_v26, 0.0 }
 0x20b   :  { %v247_v29 = vmax.f32 %v507_v27, 0.0  ;;  %v232_v30 = vpop.f32.mrb[7].mxu1 }
 0x20c   :  { %v245_v32 = vmax.f32 %v232_v30, 0.0 }
 0x20d   :  { %v249_v33 = vpack.c.bf16 %v247_v29, %v246_v28 }
 0x20e   :  { %v248_v34 = vpack.c.bf16 %v245_v32, %v244_v31 }
 0x210   :  { %524 = vmatprep.mubr.bf16.mxu0 %v248_v34 }
 0x211   :  { %525 = vmatmul.mubr.bf16.vlgmr.msra.gmra.mrb[0].mxu0 %v249_v33 }
 0x2e4   :  { %v526_v35 = vpop.f32.mrb[0].mxu0 }
 0x2e5   :  { %v355_v37 = vpop.f32.mrb[1].mxu0  ;;  %v364_v39 = vadd.f32 %v526_v35, %v459_v36 }
 0x2e6   :  { %v527_v38 = vpop.f32.mrb[2].mxu0  ;;  %v356_v42 = vadd.f32 %v459_v36, %v355_v37 }
 0x2e7   :  { %v367_v40 = vadd.f32 %v527_v38, %v459_v36  ;;  %v358_v41 = vpop.f32.mrb[3].mxu0 }
 0x2e8   :  { %v359_v43 = vadd.f32 %v459_v36, %v358_v41 }
 0x2e9   :  { %v371_v44 = vpack.c.bf16 %v367_v40, %v364_v39 }
 0x2ea   :  { %v370_v45 = vpack.c.bf16 %v359_v43, %v356_v42 }
 0x2ec   :  { %528 = vmatprep.subr.bf16.mxu1 %v370_v45 }
 0x2ed   :  { %529 = vmatpush3.bf16.msra.mxu1 %v370_v45 }
 0x2ee   :  { %530 = vmatprep.subr.bf16.mxu1 %v371_v44 }
 0x2f1   :  { %531 = vmatpush3.bf16.msra.mxu1 %v371_v44 }
 0x2f4   :  { %533 = vmatmul.mubr.msk.bf16.vlgmr.msra.gmra.mrb[8].mxu1 %vm121_vm0, %v550_v22 }
 0x3c7   :  { %v534_v46 = vpop.f32.mrb[8].mxu1 }
 0x3c8   :  { %v423_v47 = vmax.f32 %v534_v46, 0.0  ;;  %v406_v48 = vpop.f32.mrb[9].mxu1 }
 0x3c9   :  { %v421_v49 = vmax.f32 %v406_v48, 0.0  ;;  %v535_v50 = vpop.f32.mrb[10].mxu1 }
 0x3ca   :  { %427 = vst [vmem:[#allocation10 + $0x10] sm:$0xff] %v423_v47  ;;  %v424_v51 = vmax.f32 %v535_v50, 0.0  ;;  %v409_v52 = vpop.f32.mrb[11].mxu1 }
 0x3cb   :  { %425 = vst [vmem:[#allocation10] sm:$0xff] %v421_v49  ;;  %v422_v53 = vmax.f32 %v409_v52, 0.0 }
 0x3cc   :  { %428 = vst [vmem:[#allocation10 + $0x18] sm:$0xff] %v424_v51 }
 0x3cd   :  { %426 = vst [vmem:[#allocation10 + $0x8] sm:$0xff] %v422_v53 }
 0x3ce   :  { %658 = shalt.err (!%p655_p8)
}
 0x3cf   :  { %s659_s26 = scalar_lea.hbm %s825_s6, 512 }
 0x3d0   :  { %p660_p9 = scmp.ne.s32.totalorder %s825_s6, %s659_s26  ;;  %p663_p10 = scmp.lt.u32.totalorder %s659_s26, %s825_s6 }
 0x3d2   :  { %p665_p11 = pnand %p663_p10, %p660_p9 }
 0x3d4   :  { %668 = shalt.err (!%p665_p11)
}
 0x3d5   :  { %s684_s7 = smov 128   ;;  %s685_s8 = smov 8  }
 0x3d6   :  { %440 = dma.vmem_to_hbm [thread:$0]  %s435_s22, 512, %s825_s6, [#allocation4], %s684_s7, %s684_s7, %s685_s8  }
 0x3d7   :  { %675 = dma.done.wait [#allocation4], 512  }
 0x3d8   :  { %676 = vsyncadd [#allocation4], 4294966784 }
 0x3d9   :  { %444 = vsyncpa [#allocation3], 1 }
 0x3da   :  { %445 = vsyncpa [#allocation6], 1 }
 0x3db   :  { %446 = vsyncpa [#allocation9], 1 }
 0x3dc   :  { %447 = vsyncpa [#allocation4], 1 }

</bundles_post_ra>
